<compile_context>
chip_gen: v7x
topology: tpu7x:2x2x1
jax: 0.10.0
libtpu: 0.0.40
codegen_flags: <defaults>
</compile_context>

<pallas_src>
import functools

import jax
import jax.numpy as jnp
from jax import lax
from jax.experimental import pallas as pl
from jax.experimental.pallas import tpu as pltpu


# ---------------------------------------------------------------------------
# Kernel
# ---------------------------------------------------------------------------
def _sparse_embedding_kernel(packed_ref, out_ref):
    # packed_ref: (8, tn) f32, rows = [x, y, std_x, std_y, rot_a, rot_b, cx, cy]
    # out_ref:    (2, tn) f32, rows = [z_x, z_y]
    x     = packed_ref[0:1, :]
    y     = packed_ref[1:2, :]
    std_x = packed_ref[2:3, :]
    std_y = packed_ref[3:4, :]
    rot_a = packed_ref[4:5, :]
    rot_b = packed_ref[5:6, :]
    cx    = packed_ref[6:7, :]
    cy    = packed_ref[7:8, :]

    # scale = clamp(sqrt(a^2+b^2), 1e-6)  ->  1/scale = rsqrt(clamp(a^2+b^2, 1e-12))
    # (EUP rsqrt instead of sqrt + divide)
    inv_scale = lax.rsqrt(jnp.maximum(rot_a * rot_a + rot_b * rot_b, 1e-12))
    rot_a = rot_a * inv_scale
    rot_b = rot_b * inv_scale

    # std clipped to min BEFORE reciprocal (preserves PyTorch clip semantics
    # for non-positive stds); EUP approx reciprocal instead of divide.
    inv_std_x = pl.reciprocal(jnp.maximum(std_x, 1e-8), approx=True)
    inv_std_y = pl.reciprocal(jnp.maximum(std_y, 1e-8), approx=True)

    dx = cx - x
    dy = cy - y

    z_x = (rot_a * dx - rot_b * dy) * inv_std_x
    z_y = (rot_b * dx + rot_a * dy) * inv_std_y

    # Write the two rows directly — no sublane concat before the store.
    out_ref[0:1, :] = jnp.clip(z_x, -5.0, 5.0).astype(out_ref.dtype)
    out_ref[1:2, :] = jnp.clip(z_y, -5.0, 5.0).astype(out_ref.dtype)


# ---------------------------------------------------------------------------
# pallas_call wrapper
# ---------------------------------------------------------------------------
@functools.partial(jax.jit, static_argnames=("tn",))
def _sparse_embedding_pallas(packed, *, tn):
    # packed: [8, M_pad] f32, M_pad multiple of tn
    m_pad = packed.shape[1]
    grid = (m_pad // tn,)
    return pl.pallas_call(
        _sparse_embedding_kernel,
        out_shape=jax.ShapeDtypeStruct((2, m_pad), jnp.float32),
        grid_spec=pltpu.PrefetchScalarGridSpec(
            num_scalar_prefetch=0,
            grid=grid,
            in_specs=[pl.BlockSpec((8, tn), lambda i: (0, i))],
            out_specs=pl.BlockSpec((2, tn), lambda i: (0, i)),
        ),
        compiler_params=pltpu.CompilerParams(
            dimension_semantics=("parallel",),
        ),
    )(packed)


# ---------------------------------------------------------------------------
# Tiling choice
# ---------------------------------------------------------------------------
def _round_up(v, mult):
    return ((v + mult - 1) // mult) * mult


def _choose_tile(m, max_tn=32768):
    """Pick a lane tile (multiple of 128) and the padded point count."""
    m128 = _round_up(max(int(m), 1), 128)
    n_steps = max(1, -(-m128 // max_tn))  # ceil
    # Prefer >=2 grid steps when there is enough work so the "parallel" grid
    # axis can shard across v7x's two TensorCores (no-op on v5e/v6e).
    if n_steps == 1 and m128 >= 256:
        n_steps = 2
    tn = _round_up(-(-m128 // n_steps), 128)
    m_pad = _round_up(m128, tn)
    return tn, m_pad


# ---------------------------------------------------------------------------
# Public forward pass
# ---------------------------------------------------------------------------
def complex_embedding(inputs, coordinates, seq_lengths, *, max_tn=32768):
    """Forward pass of ComplexEmbedding.

    inputs:       [N, 6] float
    coordinates:  [M, 2] float
    seq_lengths:  [N]    int, sum == M (M is taken from coordinates.shape[0])
    returns:      [M, 2] float32
    """
    assert inputs.shape[1] == 6
    assert coordinates.shape[1] == 2
    m = coordinates.shape[0]
    tn, m_pad = _choose_tile(m, max_tn)

    # Glue (plain JAX, fuses into one gather/pad fusion): repeat the 6 gaussian
    # param rows along the point axis directly in lane-last [6, M] layout (no
    # [M, 6] intermediate + transpose pass), then pack with the 2 coordinate
    # rows into a single sublane-dense [8, M_pad] slab for the kernel.
    params_t = jnp.repeat(
        inputs.astype(jnp.float32).T, seq_lengths, axis=1, total_repeat_length=m
    )                                                       # [6, M]
    coords_t = coordinates.astype(jnp.float32).T            # [2, M]
    packed = jnp.concatenate([params_t, coords_t], axis=0)  # [8, M]
    packed = jnp.pad(packed, ((0, 0), (0, m_pad - m)))      # [8, M_pad]
    # Padded tail is all-zero -> clamps kick in, no NaN/Inf, sliced off below.

    out_t = _sparse_embedding_pallas(packed, tn=tn)         # [2, M_pad]
    return out_t[:, :m].T                                   # [M, 2]


# ---------------------------------------------------------------------------
# Pure-JAX reference (exact math, mirrors the PyTorch module)
# ---------------------------------------------------------------------------
def _reference(inputs, coordinates, seq_lengths):
    m = coordinates.shape[0]
    inp = jnp.repeat(
        inputs.astype(jnp.float32), seq_lengths, axis=0, total_repeat_length=m
    )
    x, y, std_x, std_y, rot_a, rot_b = jnp.split(inp, 6, axis=-1)
    scale = jnp.maximum(jnp.sqrt(rot_a**2 + rot_b**2), 1e-6)
    rot_a = rot_a / scale
    rot_b = rot_b / scale
    std_x = jnp.maximum(std_x, 1e-8)
    std_y = jnp.maximum(std_y, 1e-8)
    dx = coordinates[:, 0:1].astype(jnp.float32) - x
    dy = coordinates[:, 1:2].astype(jnp.float32) - y
    x_rot = rot_a * dx - rot_b * dy
    y_rot = rot_b * dx + rot_a * dy
    z = jnp.concatenate([x_rot / std_x, y_rot / std_y], axis=1)
    return jnp.clip(z, -5.0, 5.0)


if __name__ == "__main__":
    key = jax.random.PRNGKey(0)
    k1, k2 = jax.random.split(key)

    # Small shapes: N=4 gaussians, seq_lengths sum to M=16 points.
    n = 4
    seq_lengths = jnp.array([3, 5, 2, 6], dtype=jnp.int32)
    m = int(seq_lengths.sum())

    inputs = jax.random.normal(k1, (n, 6), dtype=jnp.float32)
    # Keep stds positive-ish like a real model would produce.
    inputs = inputs.at[:, 2:4].set(jnp.abs(inputs[:, 2:4]) + 0.1)
    coordinates = jax.random.uniform(k2, (m, 2), dtype=jnp.float32)

    out = complex_embedding(inputs, coordinates, seq_lengths)
    out = jax.block_until_ready(out)

    ref = _reference(inputs, coordinates, seq_lengths)
    assert out.shape == (m, 2)
    assert bool(jnp.all(jnp.isfinite(out)))
    # Tolerance loosened slightly vs. exact reference because the kernel uses
    # the EUP approx reciprocal / rsqrt path (~1e-3 relative).
    assert jnp.allclose(out, ref, atol=5e-2, rtol=5e-3)

    print("KERNEL_OK")
</pallas_src>

<mosaic_0001>
module attributes {stable_mosaic.version = 11 : i64} {
  func.func @_sparse_embedding_kernel(%arg0: i32, %arg1: memref<8x128xf32, #tpu.memory_space<vmem>>, %arg2: memref<2x128xf32, #tpu.memory_space<vmem>>) attributes {dimension_semantics = [#tpu.dimension_semantics<parallel>], iteration_bounds = array<i64: 1>, scalar_prefetch = 0 : i64, scratch_operands = 0 : i64, tpu.core_type = #tpu.core_type<tc>, window_params = [{transform_indices = @transform_0, window_bounds = array<i64: 8, 128>}, {transform_indices = @transform_1, window_bounds = array<i64: 2, 128>}]} {
    %c0 = arith.constant 0 : index
    %c0_0 = arith.constant 0 : index
    %0 = vector.load %arg1[%c0, %c0_0] : memref<8x128xf32, #tpu.memory_space<vmem>>, vector<1x128xf32>
    %c1 = arith.constant 1 : index
    %c0_1 = arith.constant 0 : index
    %1 = vector.load %arg1[%c1, %c0_1] : memref<8x128xf32, #tpu.memory_space<vmem>>, vector<1x128xf32>
    %c2 = arith.constant 2 : index
    %c0_2 = arith.constant 0 : index
    %2 = vector.load %arg1[%c2, %c0_2] : memref<8x128xf32, #tpu.memory_space<vmem>>, vector<1x128xf32>
    %c3 = arith.constant 3 : index
    %c0_3 = arith.constant 0 : index
    %3 = vector.load %arg1[%c3, %c0_3] : memref<8x128xf32, #tpu.memory_space<vmem>>, vector<1x128xf32>
    %c4 = arith.constant 4 : index
    %c0_4 = arith.constant 0 : index
    %4 = vector.load %arg1[%c4, %c0_4] : memref<8x128xf32, #tpu.memory_space<vmem>>, vector<1x128xf32>
    %c5 = arith.constant 5 : index
    %c0_5 = arith.constant 0 : index
    %5 = vector.load %arg1[%c5, %c0_5] : memref<8x128xf32, #tpu.memory_space<vmem>>, vector<1x128xf32>
    %c6 = arith.constant 6 : index
    %c0_6 = arith.constant 0 : index
    %6 = vector.load %arg1[%c6, %c0_6] : memref<8x128xf32, #tpu.memory_space<vmem>>, vector<1x128xf32>
    %c7 = arith.constant 7 : index
    %c0_7 = arith.constant 0 : index
    %7 = vector.load %arg1[%c7, %c0_7] : memref<8x128xf32, #tpu.memory_space<vmem>>, vector<1x128xf32>
    %8 = arith.mulf %4, %4 : vector<1x128xf32>
    %9 = arith.mulf %5, %5 : vector<1x128xf32>
    %10 = arith.addf %8, %9 : vector<1x128xf32>
    %cst = arith.constant 9.99999996E-13 : f32
    %11 = vector.broadcast %cst : f32 to vector<1x128xf32>
    %12 = arith.maximumf %10, %11 : vector<1x128xf32>
    %13 = math.rsqrt %12 : vector<1x128xf32>
    %14 = arith.mulf %4, %13 : vector<1x128xf32>
    %15 = arith.mulf %5, %13 : vector<1x128xf32>
    %cst_8 = arith.constant 9.99999993E-9 : f32
    %16 = vector.broadcast %cst_8 : f32 to vector<1x128xf32>
    %17 = arith.maximumf %2, %16 : vector<1x128xf32>
    %18 = tpu.reciprocal %17 {approx = true} : vector<1x128xf32> -> vector<1x128xf32>
    %cst_9 = arith.constant 9.99999993E-9 : f32
    %19 = vector.broadcast %cst_9 : f32 to vector<1x128xf32>
    %20 = arith.maximumf %3, %19 : vector<1x128xf32>
    %21 = tpu.reciprocal %20 {approx = true} : vector<1x128xf32> -> vector<1x128xf32>
    %22 = arith.subf %6, %0 : vector<1x128xf32>
    %23 = arith.subf %7, %1 : vector<1x128xf32>
    %24 = arith.mulf %14, %22 : vector<1x128xf32>
    %25 = arith.mulf %15, %23 : vector<1x128xf32>
    %26 = arith.subf %24, %25 : vector<1x128xf32>
    %27 = arith.mulf %26, %18 : vector<1x128xf32>
    %28 = arith.mulf %15, %22 : vector<1x128xf32>
    %29 = arith.mulf %14, %23 : vector<1x128xf32>
    %30 = arith.addf %28, %29 : vector<1x128xf32>
    %31 = arith.mulf %30, %21 : vector<1x128xf32>
    %cst_10 = arith.constant -5.000000e+00 : f32
    %cst_11 = arith.constant 5.000000e+00 : f32
    %32 = vector.broadcast %cst_10 : f32 to vector<1x128xf32>
    %33 = arith.maximumf %32, %27 : vector<1x128xf32>
    %34 = vector.broadcast %cst_11 : f32 to vector<1x128xf32>
    %35 = arith.minimumf %34, %33 : vector<1x128xf32>
    %c0_12 = arith.constant 0 : index
    %c0_13 = arith.constant 0 : index
    %36 = vector.load %arg2[%c0_12, %c0_13] : memref<2x128xf32, #tpu.memory_space<vmem>>, vector<1x128xf32>
    tpu.vector_store %arg2[%c0_12, %c0_13], %35 {strides = array<i32>} : memref<2x128xf32, #tpu.memory_space<vmem>>, vector<1x128xf32>,
    %cst_14 = arith.constant -5.000000e+00 : f32
    %cst_15 = arith.constant 5.000000e+00 : f32
    %37 = vector.broadcast %cst_14 : f32 to vector<1x128xf32>
    %38 = arith.maximumf %37, %31 : vector<1x128xf32>
    %39 = vector.broadcast %cst_15 : f32 to vector<1x128xf32>
    %40 = arith.minimumf %39, %38 : vector<1x128xf32>
    %c1_16 = arith.constant 1 : index
    %c0_17 = arith.constant 0 : index
    %41 = vector.load %arg2[%c1_16, %c0_17] : memref<2x128xf32, #tpu.memory_space<vmem>>, vector<1x128xf32>
    tpu.vector_store %arg2[%c1_16, %c0_17], %40 {strides = array<i32>} : memref<2x128xf32, #tpu.memory_space<vmem>>, vector<1x128xf32>,
    return
  }
  func.func @transform_0(%arg0: i32) -> (i32, i32) {
    %c0_i32 = arith.constant 0 : i32
    %c0_i32_0 = arith.constant 0 : i32
    return %c0_i32, %arg0 : i32, i32
  }
  func.func @transform_1(%arg0: i32) -> (i32, i32) {
    %c0_i32 = arith.constant 0 : i32
    %c0_i32_0 = arith.constant 0 : i32
    return %c0_i32, %arg0 : i32, i32
  }
}

</mosaic_0001>

<bundles_post_ra>
// kernel: _sparse_embedding_pallas.1
= control target key start
LH: loop header
LB: loop body
LE: loop exit
PB: predicated region body
PF: predicated region fallthrough
CT: control target
= control target key end

     0   :  { %6 = vsyncpa [#allocation3], 0  ;;  %s165_s0 = inlined_call_operand.hbm [shape: f32[8,128], index: 0, kind: input, shape index: {}]   ;;  %s166_s1 = inlined_call_operand.hbm [shape: f32[2,128], index: 1, kind: output, shape index: {}]  }
   0x1   :  { %7 = vsyncpa [#allocation4], 0  ;;  %s129_s6 = smov [#allocation2]   ;;  %s81_s10 = scalar_lea.hbm %s165_s0, 128 }
   0x2   :  { %s14_s7 = sshll.u32 %s129_s6, 4  ;;  %p82_p0 = scmp.ne.s32.totalorder %s165_s0, %s81_s10  ;;  %s15_s7 = int_to_ptr.vmem [resolvable:$true] %s14_s7 }
   0x3   :  { %p85_p1 = scmp.lt.u32.totalorder %s81_s10, %s165_s0 }
   0x5   :  { %p87_p2 = pnand %p85_p1, %p82_p0 }
   0x7   :  { %90 = shalt.err (!%p87_p2)
}
   0x8   :  { %s91_s15 = scalar_lea.vmem %s15_s7, 128  ;;  %p96_p4 = scmp.lt.s32.totalorder %s15_s7, %s15_s7 }
   0x9   :  { %p92_p3 = scmp.ne.s32.totalorder %s15_s7, %s91_s15  ;;  %p97_p5 = scmp.lt.s32.totalorder %s91_s15, %s91_s15 }
   0xb   :  { %p98_p6 = por %p97_p5, %p96_p4 }
   0xd   :  { %p99_p7 = pnand %p98_p6, %p92_p3 }
   0xf   :  { %102 = shalt.err (!%p99_p7)
}
  0x10   :  { %17 = dma.hbm_to_vmem [thread:$0]  %s165_s0, 128, %s15_s7, [#allocation3]  }
  0x11   :  { %125 = dma.done.wait [#allocation3], 128  }
  0x12   :  { %126 = vsyncadd [#allocation3], 4294967168  ;;  %v25_v0 = vld [vmem:[#allocation2 + $0x4] sm:$0x1]  ;;  %v26_v1 = vld [vmem:[#allocation2 + $0x5] sm:$0x1] }
  0x13   :  { %v29_v2 = vmul.f32 %v25_v0, %v25_v0  ;;  %v30_v3 = vmul.f32 %v26_v1, %v26_v1  ;;  %v23_v4 = vld [vmem:[#allocation2 + $0x2] sm:$0x1]  ;;  %v24_v6 = vld [vmem:[#allocation2 + $0x3] sm:$0x1]  ;;  %v21_v10 = vld [vmem:[#allocation2] sm:$0x1] }
  0x14   :  { %v36_v8 = vmax.f32 %v23_v4, 1e-08  ;;  %v38_v9 = vmax.f32 %v24_v6, 1e-08  ;;  %v22_v11 = vld [vmem:[#allocation2 + $0x1] sm:$0x1] }
  0x15   :  { %v31_v5 = vadd.f32 %v30_v3, %v29_v2  ;;  %v27_v12 = vld [vmem:[#allocation2 + $0x6] sm:$0x1]  ;;  %v28_v13 = vld [vmem:[#allocation2 + $0x7] sm:$0x1]  ;;  %s130_s0 = smov [#allocation5]  }
  0x16   :  { %v40_v14 = vsub.f32 %v27_v12, %v21_v10  ;;  %v41_v15 = vsub.f32 %v28_v13, %v22_v11  ;;  %s62_s18 = sshll.u32 %s130_s0, 4  ;;  %s63_s18 = int_to_ptr.vmem [resolvable:$true] %s62_s18 }
  0x17   :  { %v32_v7 = vmax.f32 %v31_v5, 1e-12  ;;  %s103_s19 = scalar_lea.vmem %s63_s18, 32  ;;  %p108_p9 = scmp.lt.s32.totalorder %s63_s18, %s63_s18 }
  0x18   :  { %p104_p8 = scmp.ne.s32.totalorder %s63_s18, %s103_s19  ;;  %p109_p10 = scmp.lt.s32.totalorder %s103_s19, %s103_s19 }
  0x19   :  { %75 = vrsqrt.f32 %v32_v7 }
  0x1a   :  { %77 = vrcp.f32 %v36_v8  ;;  %p110_p11 = por %p109_p10, %p108_p9 }
  0x1b   :  { %79 = vrcp.f32 %v38_v9 }
  0x1c   :  { %p111_p12 = pnand %p110_p11, %p104_p8 }
  0x23   :  { %v76_v16 = vpop.eup %75 }
  0x24   :  { %v34_v17 = vmul.f32 %v76_v16, %v25_v0  ;;  %v35_v18 = vmul.f32 %v76_v16, %v26_v1  ;;  %v78_v19 = vpop.eup %77 }
  0x25   :  { %v80_v24 = vpop.eup %79 }
  0x26   :  { %v42_v20 = vmul.f32 %v40_v14, %v34_v17  ;;  %v43_v21 = vmul.f32 %v41_v15, %v35_v18  ;;  %v46_v22 = vmul.f32 %v40_v14, %v35_v18  ;;  %v47_v23 = vmul.f32 %v41_v15, %v34_v17 }
  0x28   :  { %v44_v25 = vsub.f32 %v42_v20, %v43_v21  ;;  %v48_v26 = vadd.f32 %v47_v23, %v46_v22 }
  0x2a   :  { %v45_v27 = vmul.f32 %v78_v19, %v44_v25  ;;  %v49_v28 = vmul.f32 %v80_v24, %v48_v26 }
  0x2c   :  { %v71_v29 = vclamps-f32 %v45_v27, 5.0  ;;  %v72_v30 = vclamps-f32 %v49_v28, 5.0 }
  0x2e   :  { %52 = vst [vmem:[#allocation5] sm:$0x1] %v71_v29  ;;  %55 = vst [vmem:[#allocation5 + $0x1] sm:$0x1] %v72_v30 }
  0x2f   :  { %114 = shalt.err (!%p111_p12)
}
  0x30   :  { %s115_s22 = scalar_lea.hbm %s166_s1, 32 }
  0x31   :  { %p116_p13 = scmp.ne.s32.totalorder %s166_s1, %s115_s22  ;;  %p119_p0 = scmp.lt.u32.totalorder %s115_s22, %s166_s1 }
  0x33   :  { %p121_p1 = pnand %p119_p0, %p116_p13 }
  0x35   :  { %124 = shalt.err (!%p121_p1)
}
  0x36   :  { %65 = dma.vmem_to_hbm [thread:$0]  %s63_s18, 32, %s166_s1, [#allocation4]  }
  0x37   :  { %127 = dma.done.wait [#allocation4], 32  }
  0x38   :  { %128 = vsyncadd [#allocation4], 4294967264 }
  0x39   :  { %69 = vsyncpa [#allocation3], 1 }
  0x3a   :  { %70 = vsyncpa [#allocation4], 1 }

</bundles_post_ra>
